<compile_context>
chip_gen: v7x
topology: tpu7x:2x2x1
jax: 0.10.0
libtpu: 0.0.40
codegen_flags: <defaults>
</compile_context>

<pallas_src>
import functools

import jax
import jax.numpy as jnp
import numpy as np
from jax.experimental import pallas as pl
from jax.experimental.pallas import tpu as pltpu

BN_EPS = 1e-5
_LANE = 128
_SUBLANE = 8
_NEG_LARGE = float(jnp.finfo(jnp.float32).min)


def _round_up(x, m):
    return (x + m - 1) // m * m


# --------------------------------------------------------------------------
# Kernel: streamed concat-pooling + (BN-folded) 2-layer head
# --------------------------------------------------------------------------
def _pooling_head_kernel(
    x_ref,          # (tT, Bblk, H)  current time-tile of the last RNN output
    w1l_ref,        # (H,  D1p)      folded-BN1 weight, "last timestep" slice
    w1x_ref,        # (H,  D1p)      "max pool" slice
    w1m_ref,        # (H,  D1p)      "mean pool" slice
    b1_ref,         # (1,  D1p)
    w2_ref,         # (D1p, Cp)      folded-BN2 weight
    b2_ref,         # (1,  Cp)
    out_ref,        # (Bblk, Cp)     resident output block (per batch block)
    max_sc,         # VMEM (Bblk, H) running max over T
    sum_sc,         # VMEM (Bblk, H) running sum over T
    *,
    seq_len,        # static: true T
    t_tile,         # static: T-tile size
    last_local,     # static: (T - 1) % t_tile (position of last timestep)
):
    t = pl.program_id(1)
    n_t = pl.num_programs(1)

    @pl.when(t == 0)
    def _init():
        max_sc[...] = jnp.full_like(max_sc, _NEG_LARGE)
        sum_sc[...] = jnp.zeros_like(sum_sc)

    # Upcast in-kernel; the HBM stream stays in the input's native dtype.
    x = x_ref[...].astype(jnp.float32)                 # (tT, Bblk, H)

    # Mask the tail tile when t_tile does not divide T (static check).  The
    # OOB rows of the final tile contain garbage that this mask removes.
    if seq_len % t_tile != 0:
        local_t = jax.lax.broadcasted_iota(jnp.int32, (t_tile, 1, 1), 0)
        valid = (t * t_tile + local_t) < seq_len       # (tT, 1, 1)
        x_max = jnp.where(valid, x, _NEG_LARGE)
        x_sum = jnp.where(valid, x, 0.0)
    else:
        x_max = x
        x_sum = x

    # Running reductions over the T axis (VPU only, no cross-lane movement).
    max_sc[...] = jnp.maximum(max_sc[...], jnp.max(x_max, axis=0))
    sum_sc[...] = sum_sc[...] + jnp.sum(x_sum, axis=0)

    @pl.when(t == n_t - 1)
    def _finalize():
        # Last timestep lives in the final tile at a static local index.
        last = x[last_local]                           # (Bblk, H)
        mx = max_sc[...]                               # (Bblk, H)
        mn = sum_sc[...] * (1.0 / seq_len)             # (Bblk, H)

        # Linear #1 (BN1 folded in).  Concat replaced by 3 MXU pushes into
        # one f32 accumulator — no misaligned lane-axis concatenate.
        h = jnp.dot(last, w1l_ref[...], preferred_element_type=jnp.float32)
        h = h + jnp.dot(mx, w1x_ref[...], preferred_element_type=jnp.float32)
        h = h + jnp.dot(mn, w1m_ref[...], preferred_element_type=jnp.float32)
        h = jnp.maximum(h + b1_ref[...], 0.0)          # ReLU (dropout = id)

        # Linear #2 (BN2 folded in; final ReLU popped, as in the PyTorch init).
        out = jnp.dot(h, w2_ref[...], preferred_element_type=jnp.float32)
        out = out + b2_ref[...]
        out_ref[...] = out.astype(out_ref.dtype)       # lane-dense (Bblk, Cp)


# --------------------------------------------------------------------------
# Host-side parameter folding / padding
# --------------------------------------------------------------------------
def _fold_bn_into_linear(gamma, beta, mean, var, w, b, eps=BN_EPS):
    """BN(x) -> Linear folded:  (x*scale + shift) @ w + b."""
    scale = gamma * jax.lax.rsqrt(var + eps)           # (1, K)
    shift = beta - mean * scale                        # (1, K)
    w_f = w * scale.reshape(-1, 1)                     # (K, N)
    b_f = b + shift @ w                                # (1, N)
    return w_f, b_f


def _pad2(a, rows, cols):
    r, c = a.shape
    if r == rows and c == cols:
        return a
    return jnp.pad(a, ((0, rows - r), (0, cols - c)))


# --------------------------------------------------------------------------
# Wrapper
# --------------------------------------------------------------------------
def pooling_linear_classifier(x, params, predict_only=False,
                              t_tile=None, b_block=None):
    """x = (raw_outputs, outputs): lists of (T, B, H) arrays (time-major)."""
    raw_outputs, outputs = x
    last_raw_output, last_output = raw_outputs[-1], outputs[-1]

    T, B, H = last_output.shape
    D1 = params["w1"].shape[1]
    C = params["w2"].shape[1]

    D1p = _round_up(D1, _LANE)
    Cp = _round_up(C, _LANE)
    itemsize = jnp.dtype(last_output.dtype).itemsize

    # Fold BatchNorms into the linears (inference mode), once, host side.
    w1f, b1f = _fold_bn_into_linear(
        params["bn1_g"], params["bn1_b"], params["bn1_m"], params["bn1_v"],
        params["w1"], params["b1"])
    w2f, b2f = _fold_bn_into_linear(
        params["bn2_g"], params["bn2_b"], params["bn2_m"], params["bn2_v"],
        params["w2"], params["b2"])

    # Split w1 over the [last | max | mean] feature blocks, pad lane dims.
    w1l = _pad2(w1f[:H], H, D1p)
    w1x = _pad2(w1f[H:2 * H], H, D1p)
    w1m = _pad2(w1f[2 * H:], H, D1p)
    b1p = _pad2(b1f, 1, D1p)
    w2p = _pad2(w2f, D1p, Cp)
    b2p = _pad2(b2f, 1, Cp)

    # ---- batch blocking (leading "parallel" axis; feeds both v7x TCs) ------
    if (b_block is None or B % b_block != 0
            or (b_block != B and b_block % _SUBLANE != 0)):
        b_block = B // 2 if (B >= 16 and B % 16 == 0) else B
    n_b = B // b_block

    # ---- chip-aware VMEM budget --------------------------------------------
    try:
        vmem_cap = int(pltpu.get_tpu_info().vmem_capacity_bytes)
    except Exception:  # pragma: no cover - conservative fallback (v7x-sized)
        vmem_cap = 64 << 20

    param_bytes = (3 * H * D1p + D1p + D1p * Cp + Cp) * 4
    # Conservative: assume params are double-buffered; plus scratch + output.
    fixed_bytes = (2 * param_bytes
                   + 2 * b_block * H * 4
                   + 2 * b_block * Cp * 4)

    if t_tile is None:
        # ~16 MiB x-blocks on 64 MiB-VMEM parts (v7x), ~32 MiB on 128 MiB
        # parts (v5e/v6e); x is double-buffered by the Pallas pipeline.
        block_cap = (16 << 20) if vmem_cap <= (64 << 20) else (32 << 20)
        usable = max(int(0.60 * vmem_cap) - fixed_bytes, 2 << 20)
        per_block = min(max(usable // 2, 1 << 20), block_cap)
        t_tile = max(1, per_block // (b_block * H * itemsize))
    t_tile = int(min(t_tile, T))
    n_t = pl.cdiv(T, t_tile)
    last_local = (T - 1) % t_tile

    kernel = functools.partial(
        _pooling_head_kernel, seq_len=T, t_tile=t_tile, last_local=last_local)

    resident = lambda b, t: (0, 0)
    grid_spec = pltpu.PrefetchScalarGridSpec(
        num_scalar_prefetch=0,
        grid=(n_b, n_t),
        in_specs=[
            # streamed activation, native dtype, no host-side pad/cast
            pl.BlockSpec((t_tile, b_block, H), lambda b, t: (t, b, 0)),
            pl.BlockSpec((H, D1p), resident),
            pl.BlockSpec((H, D1p), resident),
            pl.BlockSpec((H, D1p), resident),
            pl.BlockSpec((1, D1p), resident),
            pl.BlockSpec((D1p, Cp), resident),
            pl.BlockSpec((1, Cp), resident),
        ],
        out_specs=pl.BlockSpec((b_block, Cp), lambda b, t: (b, 0)),
        scratch_shapes=[pltpu.VMEM((b_block, H), jnp.float32),
                        pltpu.VMEM((b_block, H), jnp.float32)],
    )

    # Scoped-VMEM limit: double-buffered x block + fixed footprint + headroom,
    # capped at 75% of this chip's physical VMEM (v7x = 64 MiB).
    vmem_needed = 2 * t_tile * b_block * H * itemsize + fixed_bytes
    vmem_limit = max(int(vmem_needed * 1.25) + (2 << 20), 8 << 20)
    vmem_limit = int(min(vmem_limit, int(0.75 * vmem_cap)))

    cost = pl.CostEstimate(
        flops=2 * B * (3 * H * D1 + D1 * C),
        transcendentals=0,
        bytes_accessed=T * B * H * itemsize + param_bytes + B * Cp * 4,
    )

    logits_padded = pl.pallas_call(
        kernel,
        out_shape=jax.ShapeDtypeStruct((B, Cp), jnp.float32),
        grid_spec=grid_spec,
        compiler_params=pltpu.CompilerParams(
            dimension_semantics=("parallel", "arbitrary"),  # batch || , T redn
            vmem_limit_bytes=vmem_limit,
        ),
        cost_estimate=cost,
    )(last_output, w1l, w1x, w1m, b1p, w2p, b2p)

    logits = logits_padded[:, :C]

    if predict_only:
        return logits
    return logits, last_raw_output, last_output


# --------------------------------------------------------------------------
# Pure-JAX reference (unfused, unfolded) for correctness checking
# --------------------------------------------------------------------------
def _ref_forward(last_output, params):
    last_output = last_output.astype(jnp.float32)
    pooled = jnp.concatenate(
        [last_output[-1], jnp.max(last_output, axis=0),
         jnp.mean(last_output, axis=0)], axis=1)
    h = (pooled - params["bn1_m"]) * jax.lax.rsqrt(params["bn1_v"] + BN_EPS)
    h = h * params["bn1_g"] + params["bn1_b"]
    h = jnp.maximum(h @ params["w1"] + params["b1"], 0.0)
    h = (h - params["bn2_m"]) * jax.lax.rsqrt(params["bn2_v"] + BN_EPS)
    h = h * params["bn2_g"] + params["bn2_b"]
    return h @ params["w2"] + params["b2"]


def init_params(key, layers):
    """Deterministic parameters for layers = [3H, D1, C]."""
    d_in, d_hidden, d_out = layers
    ks = jax.random.split(key, 8)
    return {
        "bn1_g": jnp.ones((1, d_in), jnp.float32),
        "bn1_b": jnp.zeros((1, d_in), jnp.float32),
        "bn1_m": 0.1 * jax.random.normal(ks[0], (1, d_in), jnp.float32),
        "bn1_v": jnp.abs(jax.random.normal(ks[1], (1, d_in), jnp.float32)) + 1.0,
        "w1": 0.05 * jax.random.normal(ks[2], (d_in, d_hidden), jnp.float32),
        "b1": 0.05 * jax.random.normal(ks[3], (1, d_hidden), jnp.float32),
        "bn2_g": jnp.ones((1, d_hidden), jnp.float32),
        "bn2_b": jnp.zeros((1, d_hidden), jnp.float32),
        "bn2_m": 0.1 * jax.random.normal(ks[4], (1, d_hidden), jnp.float32),
        "bn2_v": jnp.abs(jax.random.normal(ks[5], (1, d_hidden), jnp.float32)) + 1.0,
        "w2": 0.05 * jax.random.normal(ks[6], (d_hidden, d_out), jnp.float32),
        "b2": 0.05 * jax.random.normal(ks[7], (1, d_out), jnp.float32),
    }


if __name__ == "__main__":
    key = jax.random.PRNGKey(0)
    T, B, H = 8, 2, 32                      # seq=8, batch=2, hidden=32
    n_hidden, n_classes = 50, 2
    layers = [3 * H, n_hidden, n_classes]   # [96, 50, 2] ULMFiT head
    # drops = [0.4, 0.1] -> identity in eval mode

    k_in, k_p = jax.random.split(key)
    k1, k2, k3, k4 = jax.random.split(k_in, 4)
    raw_outputs = [jax.random.normal(k1, (T, B, H), jnp.float32),
                   jax.random.normal(k2, (T, B, H), jnp.float32)]
    outputs = [jax.random.normal(k3, (T, B, H), jnp.float32),
               jax.random.normal(k4, (T, B, H), jnp.float32)]

    params = init_params(k_p, layers)

    # t_tile=3 deliberately does NOT divide T=8 to exercise tail masking
    # and the multi-step T grid.
    logits, last_raw, last_out = pooling_linear_classifier(
        (raw_outputs, outputs), params, predict_only=False, t_tile=3)
    jax.block_until_ready((logits, last_raw, last_out))

    # correctness vs pure-JAX reference
    ref = _ref_forward(outputs[-1], params)
    np.testing.assert_allclose(np.asarray(logits), np.asarray(ref),
                               rtol=1e-4, atol=1e-4)
    assert logits.shape == (B, n_classes)
    assert last_raw.shape == (T, B, H) and last_out.shape == (T, B, H)

    # native-dtype streaming path (no host-side cast/pad): bf16 activations
    outputs_bf16 = [o.astype(jnp.bfloat16) for o in outputs]
    raw_bf16 = [r.astype(jnp.bfloat16) for r in raw_outputs]
    logits_bf16 = pooling_linear_classifier(
        (raw_bf16, outputs_bf16), params, predict_only=True, t_tile=3)
    jax.block_until_ready(logits_bf16)
    ref_bf16 = _ref_forward(outputs_bf16[-1], params)
    np.testing.assert_allclose(np.asarray(logits_bf16), np.asarray(ref_bf16),
                               rtol=1e-3, atol=1e-3)

    print("KERNEL_OK")
</pallas_src>

<mosaic_0001>
module attributes {stable_mosaic.version = 11 : i64} {
  func.func @_pooling_head_kernel(%arg0: i32, %arg1: i32, %arg2: memref<3x2x32xf32, #tpu.memory_space<vmem>>, %arg3: memref<32x128xf32, #tpu.memory_space<vmem>>, %arg4: memref<32x128xf32, #tpu.memory_space<vmem>>, %arg5: memref<32x128xf32, #tpu.memory_space<vmem>>, %arg6: memref<1x128xf32, #tpu.memory_space<vmem>>, %arg7: memref<128x128xf32, #tpu.memory_space<vmem>>, %arg8: memref<1x128xf32, #tpu.memory_space<vmem>>, %arg9: memref<2x128xf32, #tpu.memory_space<vmem>>, %arg10: memref<2x32xf32, #tpu.memory_space<vmem>>, %arg11: memref<2x32xf32, #tpu.memory_space<vmem>>) attributes {dimension_semantics = [#tpu.dimension_semantics<parallel>, #tpu.dimension_semantics<arbitrary>], iteration_bounds = array<i64: 1, 3>, scalar_prefetch = 0 : i64, scratch_operands = 2 : i64, tpu.core_type = #tpu.core_type<tc>, window_params = [{transform_indices = @transform_0, window_bounds = array<i64: 3, 2, 32>}, {pipeline_mode = #tpu.pipeline_mode<synchronous>, transform_indices = @transform_1, window_bounds = array<i64: 32, 128>}, {pipeline_mode = #tpu.pipeline_mode<synchronous>, transform_indices = @transform_2, window_bounds = array<i64: 32, 128>}, {pipeline_mode = #tpu.pipeline_mode<synchronous>, transform_indices = @transform_3, window_bounds = array<i64: 32, 128>}, {pipeline_mode = #tpu.pipeline_mode<synchronous>, transform_indices = @transform_4, window_bounds = array<i64: 1, 128>}, {pipeline_mode = #tpu.pipeline_mode<synchronous>, transform_indices = @transform_5, window_bounds = array<i64: 128, 128>}, {pipeline_mode = #tpu.pipeline_mode<synchronous>, transform_indices = @transform_6, window_bounds = array<i64: 1, 128>}, {transform_indices = @transform_7, window_bounds = array<i64: 2, 128>}]} {
    %c0_i32 = arith.constant 0 : i32
    %0 = arith.cmpi eq, %arg1, %c0_i32 : i32
    %1 = arith.extui %0 : i1 to i32
    %c0_i32_0 = arith.constant 0 : i32
    %2 = arith.cmpi ne, %1, %c0_i32_0 : i32
    scf.if %2 {
      %cst_15 = arith.constant -3.40282347E+38 : f32
      %29 = vector.broadcast %cst_15 : f32 to vector<2x32xf32>
      %c0_16 = arith.constant 0 : index
      %c0_17 = arith.constant 0 : index
      %30 = vector.load %arg10[%c0_16, %c0_17] : memref<2x32xf32, #tpu.memory_space<vmem>>, vector<2x32xf32>
      tpu.vector_store %arg10[%c0_16, %c0_17], %29 {strides = array<i32>} : memref<2x32xf32, #tpu.memory_space<vmem>>, vector<2x32xf32>,
      %cst_18 = arith.constant 0.000000e+00 : f32
      %31 = vector.broadcast %cst_18 : f32 to vector<2x32xf32>
      %c0_19 = arith.constant 0 : index
      %c0_20 = arith.constant 0 : index
      %32 = vector.load %arg11[%c0_19, %c0_20] : memref<2x32xf32, #tpu.memory_space<vmem>>, vector<2x32xf32>
      tpu.vector_store %arg11[%c0_19, %c0_20], %31 {strides = array<i32>} : memref<2x32xf32, #tpu.memory_space<vmem>>, vector<2x32xf32>,
    } else {
    }
    %c0 = arith.constant 0 : index
    %c0_1 = arith.constant 0 : index
    %c0_2 = arith.constant 0 : index
    %3 = vector.load %arg2[%c0, %c0_1, %c0_2] : memref<3x2x32xf32, #tpu.memory_space<vmem>>, vector<3x2x32xf32>
    %4 = tpu.iota {dimensions = array<i32: 0>} : vector<3x1x1xi32>
    %c3_i32 = arith.constant 3 : i32
    %5 = arith.muli %arg1, %c3_i32 : i32
    %6 = vector.broadcast %5 : i32 to vector<3x1x1xi32>
    %7 = arith.addi %6, %4 : vector<3x1x1xi32>
    %c8_i32 = arith.constant 8 : i32
    %8 = vector.broadcast %c8_i32 : i32 to vector<3x1x1xi32>
    %9 = arith.cmpi slt, %7, %8 : vector<3x1x1xi32>
    %cst = arith.constant -3.40282347E+38 : f32
    %10 = vector.shape_cast %9 : vector<3x1x1xi1> to vector<3x1x1xi1>
    %11 = vector.broadcast %10 : vector<3x1x1xi1> to vector<3x2x32xi1>
    %12 = vector.broadcast %cst : f32 to vector<3x2x32xf32>
    %13 = arith.select %11, %3, %12 : vector<3x2x32xi1>, vector<3x2x32xf32>
    %cst_3 = arith.constant 0.000000e+00 : f32
    %14 = vector.shape_cast %9 : vector<3x1x1xi1> to vector<3x1x1xi1>
    %15 = vector.broadcast %14 : vector<3x1x1xi1> to vector<3x2x32xi1>
    %16 = vector.broadcast %cst_3 : f32 to vector<3x2x32xf32>
    %17 = arith.select %15, %3, %16 : vector<3x2x32xi1>, vector<3x2x32xf32>
    %c0_4 = arith.constant 0 : index
    %c0_5 = arith.constant 0 : index
    %18 = vector.load %arg10[%c0_4, %c0_5] : memref<2x32xf32, #tpu.memory_space<vmem>>, vector<2x32xf32>
    %cst_6 = arith.constant dense<0xFF800000> : vector<2x32xf32>
    %19 = vector.multi_reduction <maximumf>, %13, %cst_6 [0] : vector<3x2x32xf32> to vector<2x32xf32>
    %20 = arith.maximumf %18, %19 : vector<2x32xf32>
    %c0_7 = arith.constant 0 : index
    %c0_8 = arith.constant 0 : index
    %21 = vector.load %arg10[%c0_7, %c0_8] : memref<2x32xf32, #tpu.memory_space<vmem>>, vector<2x32xf32>
    tpu.vector_store %arg10[%c0_7, %c0_8], %20 {strides = array<i32>} : memref<2x32xf32, #tpu.memory_space<vmem>>, vector<2x32xf32>,
    %c0_9 = arith.constant 0 : index
    %c0_10 = arith.constant 0 : index
    %22 = vector.load %arg11[%c0_9, %c0_10] : memref<2x32xf32, #tpu.memory_space<vmem>>, vector<2x32xf32>
    %cst_11 = arith.constant dense<0.000000e+00> : vector<2x32xf32>
    %23 = vector.multi_reduction <add>, %17, %cst_11 [0] : vector<3x2x32xf32> to vector<2x32xf32>
    %24 = arith.addf %22, %23 : vector<2x32xf32>
    %c0_12 = arith.constant 0 : index
    %c0_13 = arith.constant 0 : index
    %25 = vector.load %arg11[%c0_12, %c0_13] : memref<2x32xf32, #tpu.memory_space<vmem>>, vector<2x32xf32>
    tpu.vector_store %arg11[%c0_12, %c0_13], %24 {strides = array<i32>} : memref<2x32xf32, #tpu.memory_space<vmem>>, vector<2x32xf32>,
    %c2_i32 = arith.constant 2 : i32
    %26 = arith.cmpi eq, %arg1, %c2_i32 : i32
    %27 = arith.extui %26 : i1 to i32
    %c0_i32_14 = arith.constant 0 : i32
    %28 = arith.cmpi ne, %27, %c0_i32_14 : i32
    scf.if %28 {
      %29 = vector.extract_strided_slice %3 {offsets = [1, 0, 0], sizes = [1, 2, 32], strides = [1, 1, 1]} : vector<3x2x32xf32> to vector<1x2x32xf32>
      %30 = vector.shape_cast %29 : vector<1x2x32xf32> to vector<2x32xf32>
      %c0_15 = arith.constant 0 : index
      %c0_16 = arith.constant 0 : index
      %31 = vector.load %arg10[%c0_15, %c0_16] : memref<2x32xf32, #tpu.memory_space<vmem>>, vector<2x32xf32>
      %c0_17 = arith.constant 0 : index
      %c0_18 = arith.constant 0 : index
      %32 = vector.load %arg11[%c0_17, %c0_18] : memref<2x32xf32, #tpu.memory_space<vmem>>, vector<2x32xf32>
      %cst_19 = arith.constant 1.250000e-01 : f32
      %33 = vector.broadcast %cst_19 : f32 to vector<2x32xf32>
      %34 = arith.mulf %32, %33 : vector<2x32xf32>
      %c0_20 = arith.constant 0 : index
      %c0_21 = arith.constant 0 : index
      %35 = vector.load %arg3[%c0_20, %c0_21] : memref<32x128xf32, #tpu.memory_space<vmem>>, vector<32x128xf32>
      %cst_22 = arith.constant dense<0.000000e+00> : vector<2x128xf32>
      %36 = tpu.matmul %30, %35, %cst_22 {dimension_numbers = #tpu.dot_dimension_numbers<[1], [0], [0], [1], [0, 0, 1, 1], [], []>} : vector<2x32xf32>, vector<32x128xf32>, vector<2x128xf32> -> vector<2x128xf32>
      %c0_23 = arith.constant 0 : index
      %c0_24 = arith.constant 0 : index
      %37 = vector.load %arg4[%c0_23, %c0_24] : memref<32x128xf32, #tpu.memory_space<vmem>>, vector<32x128xf32>
      %cst_25 = arith.constant dense<0.000000e+00> : vector<2x128xf32>
      %38 = tpu.matmul %31, %37, %cst_25 {dimension_numbers = #tpu.dot_dimension_numbers<[1], [0], [0], [1], [0, 0, 1, 1], [], []>} : vector<2x32xf32>, vector<32x128xf32>, vector<2x128xf32> -> vector<2x128xf32>
      %39 = arith.addf %36, %38 : vector<2x128xf32>
      %c0_26 = arith.constant 0 : index
      %c0_27 = arith.constant 0 : index
      %40 = vector.load %arg5[%c0_26, %c0_27] : memref<32x128xf32, #tpu.memory_space<vmem>>, vector<32x128xf32>
      %cst_28 = arith.constant dense<0.000000e+00> : vector<2x128xf32>
      %41 = tpu.matmul %34, %40, %cst_28 {dimension_numbers = #tpu.dot_dimension_numbers<[1], [0], [0], [1], [0, 0, 1, 1], [], []>} : vector<2x32xf32>, vector<32x128xf32>, vector<2x128xf32> -> vector<2x128xf32>
      %42 = arith.addf %39, %41 : vector<2x128xf32>
      %c0_29 = arith.constant 0 : index
      %c0_30 = arith.constant 0 : index
      %43 = vector.load %arg6[%c0_29, %c0_30] : memref<1x128xf32, #tpu.memory_space<vmem>>, vector<1x128xf32>
      %44 = vector.broadcast %43 : vector<1x128xf32> to vector<2x128xf32>
      %45 = arith.addf %42, %44 : vector<2x128xf32>
      %cst_31 = arith.constant 0.000000e+00 : f32
      %46 = vector.broadcast %cst_31 : f32 to vector<2x128xf32>
      %47 = arith.maximumf %45, %46 : vector<2x128xf32>
      %c0_32 = arith.constant 0 : index
      %c0_33 = arith.constant 0 : index
      %48 = vector.load %arg7[%c0_32, %c0_33] : memref<128x128xf32, #tpu.memory_space<vmem>>, vector<128x128xf32>
      %cst_34 = arith.constant dense<0.000000e+00> : vector<2x128xf32>
      %49 = tpu.matmul %47, %48, %cst_34 {dimension_numbers = #tpu.dot_dimension_numbers<[1], [0], [0], [1], [0, 0, 1, 1], [], []>} : vector<2x128xf32>, vector<128x128xf32>, vector<2x128xf32> -> vector<2x128xf32>
      %c0_35 = arith.constant 0 : index
      %c0_36 = arith.constant 0 : index
      %50 = vector.load %arg8[%c0_35, %c0_36] : memref<1x128xf32, #tpu.memory_space<vmem>>, vector<1x128xf32>
      %51 = vector.broadcast %50 : vector<1x128xf32> to vector<2x128xf32>
      %52 = arith.addf %49, %51 : vector<2x128xf32>
      %c0_37 = arith.constant 0 : index
      %c0_38 = arith.constant 0 : index
      %53 = vector.load %arg9[%c0_37, %c0_38] : memref<2x128xf32, #tpu.memory_space<vmem>>, vector<2x128xf32>
      tpu.vector_store %arg9[%c0_37, %c0_38], %52 {strides = array<i32>} : memref<2x128xf32, #tpu.memory_space<vmem>>, vector<2x128xf32>,
    } else {
    }
    return
  }
  func.func @transform_0(%arg0: i32, %arg1: i32) -> (i32, i32, i32) {
    %c0_i32 = arith.constant 0 : i32
    %c0_i32_0 = arith.constant 0 : i32
    return %arg1, %arg0, %c0_i32 : i32, i32, i32
  }
  func.func @transform_1(%arg0: i32, %arg1: i32) -> (i32, i32) {
    %c0_i32 = arith.constant 0 : i32
    %c0_i32_0 = arith.constant 0 : i32
    %c0_i32_1 = arith.constant 0 : i32
    return %c0_i32, %c0_i32_0 : i32, i32
  }
  func.func @transform_2(%arg0: i32, %arg1: i32) -> (i32, i32) {
    %c0_i32 = arith.constant 0 : i32
    %c0_i32_0 = arith.constant 0 : i32
    %c0_i32_1 = arith.constant 0 : i32
    return %c0_i32, %c0_i32_0 : i32, i32
  }
  func.func @transform_3(%arg0: i32, %arg1: i32) -> (i32, i32) {
    %c0_i32 = arith.constant 0 : i32
    %c0_i32_0 = arith.constant 0 : i32
    %c0_i32_1 = arith.constant 0 : i32
    return %c0_i32, %c0_i32_0 : i32, i32
  }
  func.func @transform_4(%arg0: i32, %arg1: i32) -> (i32, i32) {
    %c0_i32 = arith.constant 0 : i32
    %c0_i32_0 = arith.constant 0 : i32
    %c0_i32_1 = arith.constant 0 : i32
    return %c0_i32, %c0_i32_0 : i32, i32
  }
  func.func @transform_5(%arg0: i32, %arg1: i32) -> (i32, i32) {
    %c0_i32 = arith.constant 0 : i32
    %c0_i32_0 = arith.constant 0 : i32
    %c0_i32_1 = arith.constant 0 : i32
    return %c0_i32, %c0_i32_0 : i32, i32
  }
  func.func @transform_6(%arg0: i32, %arg1: i32) -> (i32, i32) {
    %c0_i32 = arith.constant 0 : i32
    %c0_i32_0 = arith.constant 0 : i32
    %c0_i32_1 = arith.constant 0 : i32
    return %c0_i32, %c0_i32_0 : i32, i32
  }
  func.func @transform_7(%arg0: i32, %arg1: i32) -> (i32, i32) {
    %c0_i32 = arith.constant 0 : i32
    %c0_i32_0 = arith.constant 0 : i32
    return %arg0, %c0_i32 : i32, i32
  }
}

</mosaic_0001>

<bundles_post_ra>
// kernel: tpu_custom_call.1
= control target key start
LH: loop header
LB: loop body
LE: loop exit
PB: predicated region body
PF: predicated region fallthrough
CT: control target
= control target key end

     0   :  { %s1755_s0 = inlined_call_operand.hbm [shape: f32[8,2,32], index: 0, kind: input, shape index: {}]   ;;  %s1756_s1 = inlined_call_operand.hbm [shape: f32[32,128], index: 1, kind: input, shape index: {}]   ;;  %s1757_s2 = inlined_call_operand.hbm [shape: f32[32,128], index: 2, kind: input, shape index: {}]   ;;  %s1758_s3 = inlined_call_operand.hbm [shape: f32[32,128], index: 3, kind: input, shape index: {}]   ;;  %s1759_s4 = inlined_call_operand.vmem [shape: f32[1,128], index: 4, kind: input, shape index: {}]   ;;  %s1760_s5 = inlined_call_operand.hbm [shape: f32[128,128], index: 5, kind: input, shape index: {}]   ;;  %s1761_s6 = inlined_call_operand.vmem [shape: f32[1,128], index: 6, kind: input, shape index: {}]   ;;  %s1762_s7 = inlined_call_operand.hbm [shape: f32[2,128], index: 7, kind: output, shape index: {}]  }
   0x1   :  { %1770 = sst [smem:[#allocation20_spill]] %s1756_s1 }
   0x2   :  { %1771 = sst [smem:[#allocation21_spill]] %s1761_s6 }
   0x3   :  { %1772 = sst [smem:[#allocation22_spill]] %s1762_s7 }
   0x4   :  { %12 = vsyncpa [#allocation5], 0 }
   0x5   :  { %14 = vsyncpa [#allocation5 + $0x1], 0 }
   0x6   :  { %15 = vsyncpa [#allocation8], 0 }
   0x7   :  { %16 = vsyncpa [#allocation11], 0 }
   0x8   :  { %17 = vsyncpa [#allocation6], 0  ;;  %s1437_s24 = smov 0   ;;  %s1439_s25 = smov 0  }
   0x9   :  { %s1441_s26 = smov 0   ;;  %s1443_s27 = smov 0  }
   0xa   :  { %s1445_s28 = smov 0   ;;  %s1447_s29 = smov 0  }
   0xb LB: > { %s1767_s30 = sadd.s32 4294967295, %s1380_s29   ;;  %s32_s8 = sadd.s32 1, %s1376_s28  ;;  %s1380_s29 = sphi %s1447_s29, %s23_s29   ;;  %s1376_s28 = sphi %s1445_s28, %s1796_s28   ;;  %s1372_s27 = sphi %s1443_s27, %s1795_s27   ;;  %s1368_s26 = sphi %s1441_s26, %s1794_s26   ;;  %s1364_s25 = sphi %s1439_s25, %s1793_s25   ;;  %s1360_s24 = sphi %s1437_s24, %s1792_s24  }
   0xc   : > { %p33_p0 = scmp.ge.s32.totalorder %s32_s8, 3  ;;  %s44_s9 = sadd.s32 1, %s1368_s26 }
   0xd   : > { %p51_p1 = scmp.ne.s32.totalorder %s1368_s26, %s1364_s25  ;;  %p52_p2 = scmp.eq.s32.totalorder %s1380_s29, 0 }
   0xe   : > { %s1798_s8 = smov (%p33_p0, %s32_s8), 0  ;;  %p57_p4 = scmp.ne.s32.totalorder %s1364_s25, %s1360_s24 }
   0xf   : > { %1773 = sst [smem:[#allocation18_spill]] %s1798_s8  ;;  %p1473_p3 = por %p52_p2, %p51_p1 }
  0x10   : > { %s39_s11 = ssub.s32 %s1376_s28, %s1798_s8  ;;  %p1482_p5 = scmp.eq.s32.totalorder %s1767_s30, 0 }
  0x11   : > { %s1774_s10 = scalar_select %p1473_p3, 1, 0 }
  0x12   : > { %s1775_s12 = scalar_select %p1482_p5, 1, 0 }
  0x13   : > { %p42_p6 = scmp.eq.s32.totalorder %s39_s11, 0  ;;  %p874_p7 = scmp.ge.s32.totalorder %s1380_s29, 1 }
  0x14   : > { %p1489_p8 = por %p1482_p5, %p57_p4  ;;  %p220_p9 = scmp.lt.s32.totalorder %s1380_s29, 4 }
  0x15   : > { %s1495_s14 = scalar_select %p42_p6, %s1368_s26, %s44_s9  }
  0x16   : > { %s1776_s13 = scalar_select %p1489_p8, 1, 0 }
  0x17   : > { %1777 = sst [smem:[#allocation19_spill]] %s1495_s14  ;;  %p1497_p10 = pnand %p874_p7, %p220_p9 }
  0x18   : > { %s1382_s16 = smov [#allocation7]   ;;  %s1383_s19 = smov [#allocation10]  }
  0x19   : > { %s1778_s15 = scalar_select %p1497_p10, 1, 0 }
  0x1a   : > { %p1067_p11 = pneg %p1497_p10  ;;  %s232_s17 = sshll.u32 %s1382_s16, 4  ;;  %s233_s17 = int_to_ptr.vmem [resolvable:$true] %s232_s17 }
  0x1b   : > { %s258_s20 = sshll.u32 %s1383_s19, 4  ;;  %s1780_s1 = sld [smem:[#allocation20_spill]]  ;;  %s1509_s20 = int_to_ptr.vmem [resolvable:$true] %s258_s20 }
  0x1c   : > { %p1505_p12 = pnand %p1067_p11, %p1482_p5 }
  0x1e   : > { %p1519_p0 = pneg %p1505_p12 }
  0x21   : > { %s1152_s23 = scalar_lea.hbm %s1780_s1, 512 }
  0x22   : > { %p1153_p13 = scmp.ne.s32.totalorder %s1780_s1, %s1152_s23  ;;  %p1159_p4 = scmp.lt.u32.totalorder %s1152_s23, %s1780_s1 }
  0x24   : > { %p1155_p1 = pnand %p1519_p0, %p1153_p13 }
  0x26   : > { %p1156_p2 = pneg %p1155_p1 }
  0x28   : > { %p1161_p6 = pnand %p1159_p4, %p1156_p2 }
  0x2a   : > { %1164 = shalt.err (!%p1161_p6)
}
  0x2b   : > { %s1165_s21 = scalar_lea.vmem %s233_s17, 512  ;;  %p1173_p5 = scmp.lt.s32.totalorder %s233_s17, %s233_s17 }
  0x2c   : > { %p1166_p7 = scmp.ne.s32.totalorder %s233_s17, %s1165_s21  ;;  %p1174_p8 = scmp.lt.s32.totalorder %s1165_s21, %s1165_s21 }
  0x2e   : > { %p1168_p9 = pnand %p1166_p7, %p1519_p0  ;;  %p1175_p10 = por %p1174_p8, %p1173_p5 }
  0x30   : > { %p1169_p11 = pneg %p1168_p9 }
  0x32   : > { %p1176_p3 = pnand %p1175_p10, %p1169_p11 }
  0x34   : > { %1179 = shalt.err (!%p1176_p3)
}
  0x35   : > { %s1384_s22 = smov 128   ;;  %s1385_s24 = smov 8  }
  0x36   : > { %1070 = dma.hbm_to_vmem [thread:$0]  (!%p1505_p12), %s1780_s1, 512, %s233_s17, [#allocation8], %s1384_s22, %s1384_s22, %s1385_s24  }
  0x37   : > { %s1180_s30 = scalar_lea.hbm %s1758_s3, 512 }
  0x38   : > { %p1181_p3 = scmp.ne.s32.totalorder %s1758_s3, %s1180_s30  ;;  %p1187_p10 = scmp.lt.u32.totalorder %s1180_s30, %s1758_s3 }
  0x3a   : > { %p1183_p5 = pnand %p1181_p3, %p1519_p0 }
  0x3c   : > { %p1184_p8 = pneg %p1183_p5 }
  0x3e   : > { %p1189_p13 = pnand %p1187_p10, %p1184_p8 }
  0x40   : > { %1192 = shalt.err (!%p1189_p13)
}
  0x41   : > { %s1193_s17 = scalar_lea.vmem %s1509_s20, 512  ;;  %p1201_p6 = scmp.lt.s32.totalorder %s1509_s20, %s1509_s20 }
  0x42   : > { %p1194_p1 = scmp.ne.s32.totalorder %s1509_s20, %s1193_s17  ;;  %p1202_p7 = scmp.lt.s32.totalorder %s1193_s17, %s1193_s17 }
  0x44   : > { %p1196_p2 = pnand %p1194_p1, %p1519_p0  ;;  %p1203_p9 = por %p1202_p7, %p1201_p6 }
  0x46   : > { %p1197_p4 = pneg %p1196_p2 }
  0x48   : > { %p1204_p11 = pnand %p1203_p9, %p1197_p4 }
  0x4a   : > { %1207 = shalt.err (!%p1204_p11)
}
  0x4b   : > { %1076 = dma.hbm_to_vmem [thread:$0]  (!%p1505_p12), %s1758_s3, 512, %s1509_s20, [#allocation11], %s1384_s22, %s1384_s22, %s1385_s24  }
  0x4c   : > { %s1386_s8 = smov [#allocation9]   ;;  %s1387_s23 = smov [#allocation12]  }
  0x4d   : > { %s245_s14 = sshll.u32 %s1386_s8, 4  ;;  %s274_s9 = sshll.u32 %s1387_s23, 4  ;;  %s246_s14 = int_to_ptr.vmem [resolvable:$true] %s245_s14  ;;  %s275_s9 = int_to_ptr.vmem [resolvable:$true] %s274_s9 }
  0x4e   : > { %s1208_s21 = scalar_lea.hbm %s1757_s2, 512 }
  0x4f   : > { %p1209_p3 = scmp.ne.s32.totalorder %s1757_s2, %s1208_s21  ;;  %p1215_p10 = scmp.lt.u32.totalorder %s1208_s21, %s1757_s2 }
  0x51   : > { %p1211_p5 = pnand %p1209_p3, %p1519_p0 }
  0x53   : > { %p1212_p8 = pneg %p1211_p5 }
  0x55   : > { %p1217_p13 = pnand %p1215_p10, %p1212_p8 }
  0x57   : > { %1220 = shalt.err (!%p1217_p13)
}
  0x58   : > { %s1221_s20 = scalar_lea.vmem %s246_s14, 512  ;;  %p1229_p6 = scmp.lt.s32.totalorder %s246_s14, %s246_s14 }
  0x59   : > { %p1222_p1 = scmp.ne.s32.totalorder %s246_s14, %s1221_s20  ;;  %p1230_p7 = scmp.lt.s32.totalorder %s1221_s20, %s1221_s20 }
  0x5b   : > { %p1224_p2 = pnand %p1222_p1, %p1519_p0  ;;  %p1231_p9 = por %p1230_p7, %p1229_p6 }
  0x5d   : > { %p1225_p4 = pneg %p1224_p2 }
  0x5f   : > { %p1232_p11 = pnand %p1231_p9, %p1225_p4 }
  0x61   : > { %1235 = shalt.err (!%p1232_p11)
}
  0x62   : > { %1073 = dma.hbm_to_vmem [thread:$0]  (!%p1505_p12), %s1757_s2, 512, %s246_s14, [#allocation8], %s1384_s22, %s1384_s22, %s1385_s24  }
  0x63   : > { %s1236_s23 = scalar_lea.hbm %s1760_s5, 2048 }
  0x64   : > { %p1237_p3 = scmp.ne.s32.totalorder %s1760_s5, %s1236_s23  ;;  %p1243_p10 = scmp.lt.u32.totalorder %s1236_s23, %s1760_s5 }
  0x66   : > { %p1239_p5 = pnand %p1237_p3, %p1519_p0 }
  0x68   : > { %p1240_p8 = pneg %p1239_p5 }
  0x6a   : > { %p1245_p13 = pnand %p1243_p10, %p1240_p8 }
  0x6c   : > { %1248 = shalt.err (!%p1245_p13)
}
  0x6d   : > { %s1249_s7 = scalar_lea.vmem %s275_s9, 2048  ;;  %p1257_p6 = scmp.lt.s32.totalorder %s275_s9, %s275_s9 }
  0x6e   : > { %p1250_p1 = scmp.ne.s32.totalorder %s275_s9, %s1249_s7  ;;  %p1258_p7 = scmp.lt.s32.totalorder %s1249_s7, %s1249_s7 }
  0x70   : > { %p1252_p2 = pnand %p1250_p1, %p1519_p0  ;;  %p1259_p9 = por %p1258_p7, %p1257_p6 }
  0x72   : > { %p1253_p4 = pneg %p1252_p2 }
  0x74   : > { %p1260_p11 = pnand %p1259_p9, %p1253_p4 }
  0x76   : > { %1263 = shalt.err (!%p1260_p11)
}
  0x77   : > { %1079 = dma.hbm_to_vmem [thread:$0]  (!%p1505_p12), %s1760_s5, 2048, %s275_s9, [#allocation11], %s1384_s22, %s1384_s22, %s1385_s24  }
  0x78   : > { %p879_p3 = scmp.ge.s32.totalorder %s1380_s29, 3 }
  0x79   : > { %p1782_p0 = scmp.ne.s32.totalorder (!%p879_p3), %s1774_s10, 0 }
  0x7a   : > { %287 = sbr.rel (%p879_p3) target bundleno = 164 (0xa4), region = 40 }
  0x81   : > { %290 = sbr.rel (!%p1782_p0) target bundleno = 164 (0xa4), region = 44  ;;  %s291_s11 = sand.u32 (%p1782_p0), 1, %s1368_s26  }
  0x82   : > { %s296_s1 = smul.u32 (%p1782_p0), 3, %s1376_s28  ;;  %s1614_s23 = scalar_lea.sflag (%p1782_p0), [#allocation5], %s291_s11 }
  0x83   : > { %s1044_s6 = smul.u32 (%p1782_p0), 6, %s291_s11 }
  0x84   : > { %s297_s30 = ssub.s32 (%p1782_p0), 8, %s296_s1 }
  0x85   : > { %p298_p5 = scmp.lt.s32.totalorder (%p1782_p0), %s297_s30, 3  ;;  %s295_s22 = scalar_lea.vmem (%p1782_p0), [#allocation4], %s1044_s6 }
  0x88   : > { %s1800_s30 = smov (!%p298_p5, %s297_s30), 3 }
  0x89   : > { %s1611_s18 = sshll.u32 %s1800_s30, 5 }
  0x8a   : > { %s302_s8 = ssub.s32 96, %s1611_s18 }
  0x8b   : > { %303 = vsyncadd %s1614_s23, %s302_s8  ;;  %p881_p12 = scmp.ne.s32.totalorder %s1611_s18, 0  ;;  %s901_s10 = smul.u32 96, %s1376_s28 }
  0x8c   : > { %s309_s24 = sshll.u32 %s295_s22, 4  ;;  %s1268_s14 = scalar_lea.hbm %s1755_s0, 256  ;;  %s1624_s24 = int_to_ptr.vmem [resolvable:$true] %s309_s24 }
  0x8d   : > { %s1622_s19 = scalar_lea.hbm %s1755_s0, %s901_s10 }
  0x8e   : > { %s1264_s21 = scalar_lea.hbm %s1622_s19, %s1611_s18  ;;  %p1269_p1 = scmp.lt.u32.totalorder %s1622_s19, %s1755_s0 }
  0x8f   : > { %p1265_p8 = scmp.ne.s32.totalorder %s1622_s19, %s1264_s21  ;;  %p1270_p2 = scmp.lt.u32.totalorder %s1268_s14, %s1264_s21 }
  0x90   : > { %p1272_p6 = scmp.lt.u32.totalorder %s1264_s21, %s1622_s19 }
  0x91   : > { %p1266_p10 = pnand %p1265_p8, %p881_p12  ;;  %p1271_p4 = por %p1270_p2, %p1269_p1 }
  0x93   : > { %p1267_p13 = pneg %p1266_p10  ;;  %p1273_p7 = por %p1272_p6, %p1271_p4 }
  0x95   : > { %p1274_p9 = pnand %p1273_p7, %p1267_p13 }
  0x97   : > { %1277 = shalt.err (!%p1274_p9)
}
  0x98   : > { %s1278_s1 = scalar_lea.vmem %s1624_s24, %s1611_s18  ;;  %s1388_s6 = smov [#allocation4]  }
  0x99   : > { %p1279_p11 = scmp.ne.s32.totalorder %s1624_s24, %s1278_s1  ;;  %s1282_s30 = sshll.u32 %s1388_s6, 4  ;;  %s1283_s30 = int_to_ptr.vmem [resolvable:$false] %s1282_s30 }
  0x9a   : > { %s1284_s8 = scalar_lea.vmem %s1283_s30, 192  ;;  %p1285_p5 = scmp.lt.s32.totalorder %s1624_s24, %s1283_s30 }
  0x9b   : > { %p1280_p3 = pnand %p1279_p11, %p881_p12  ;;  %p1286_p8 = scmp.lt.s32.totalorder %s1284_s8, %s1278_s1 }
  0x9d   : > { %p1281_p0 = pneg %p1280_p3  ;;  %p1287_p10 = por %p1286_p8, %p1285_p5 }
  0x9f   : > { %p1288_p1 = pnand %p1287_p10, %p1281_p0 }
  0xa1   : > { %1291 = shalt.err (!%p1288_p1)
}
  0xa2   : > { %s1389_s22 = smov 32   ;;  %s1390_s10 = smov 2  }
  0xa3   : > { %315 = dma.hbm_to_vmem [thread:$0]  (%p881_p12), %s1622_s19, %s1611_s18, %s1624_s24, %s1614_s23, %s1389_s22, %s1389_s22, %s1390_s10  }
  0xa4 PF: > { %p1783_p13 = scmp.ne.s32.totalorder %s1778_s15, 0 }
  0xa5   : > { %s323_s9 = sand.u32 (!%p1783_p13), 1, %s1364_s25   ;;  %p1784_p2 = scmp.ne.s32.totalorder (!%p1783_p13), %s1776_s13, 0 }
  0xa6   : > { %321 = sbr.rel (%p1783_p13) target bundleno = 690 (0x2b2), region = 48  ;;  %s324_s21 = scalar_lea.sflag (!%p1783_p13), [#allocation5], %s323_s9 }
  0xa7   : > { %s1045_s16 = smul.u32 (!%p1783_p13), 6, %s323_s9 }
  0xa9   : > { %s327_s17 = scalar_lea.vmem (!%p1783_p13), [#allocation4], %s1045_s16 }
  0xad   : > { %1343 = dma.done.wait (%p1784_p2), %s324_s21, 96  }
  0xae   : > { %1345 = vsyncadd (%p1784_p2), %s324_s21, 4294967200  ;;  %p1785_p4 = scmp.ne.s32.totalorder %s1775_s12, 0 }
  0xb0   : > { %1347 = dma.done.wait (%p1785_p4), [#allocation8], 1024  }
  0xb1   : > { %1349 = vsyncadd (%p1785_p4), [#allocation8], 4294966272 }
  0xb2   : > { %1351 = dma.done.wait (%p1785_p4), [#allocation11], 2560  }
  0xb3   : > { %1353 = vsyncadd (%p1785_p4), [#allocation11], 4294964736  ;;  %p890_p12 = scmp.ne.s32.totalorder %s1372_s27, 0 }
  0xb4   : > { %vm378_vm0 = vcmask (!%p890_p12), 254976   ;;  %v1391_v0 = vmov (!%p890_p12), -3.4028235e+38   ;;  %v1392_v1 = vmov (!%p890_p12), 0.0  }
  0xb5   : > { %377 = sbr.rel (%p890_p12) target bundleno = 188 (0xbc), region = 72  ;;  %379 = vst.msk [vmem:[#allocation2] sm:$0x3] (!%p890_p12), %vm378_vm0, %v1391_v0  ;;  %380 = vst.msk [vmem:[#allocation3] sm:$0x3] (!%p890_p12), %vm378_vm0, %v1392_v1 }
  0xbc PF: > { %s384_s13 = smul.u32 3, %s1372_s27  ;;  %v381_v2 = vld [vmem:[%s327_s17] sm:$0x3]  ;;  %v1668_v3 = vld [vmem:[%s327_s17 + $0x2] sm:$0x3]  ;;  %vm404_vm1 = vcmask 254976  }
  0xbd   : > { %v383_v5 = vld [vmem:[%s327_s17 + $0x4] sm:$0x3]  ;;  %v403_v22 = vld [vmem:[#allocation2] sm:$0x3]  ;;  %v412_v23 = vld [vmem:[#allocation3] sm:$0x3] }
  0xbe   : > { %v385_v4 = vstv %s384_s13  ;;  %p891_p6 = scmp.ne.s32.totalorder %s1372_s27, 2 }
  0xbf   : > { %v386_v6 = vadd.s32 1, %v385_v4  ;;  %v387_v7 = vadd.s32 2, %v385_v4  ;;  %vm388_vm2 = vcmp.lt.s32.totalorder %v385_v4, 8  ;;  %v431_v28 = vld [vmem:[#allocation9] sm:$0xff] (!%p891_p6)  ;;  %v432_v29 = vld [vmem:[#allocation9 + $0x8] sm:$0xff] (!%p891_p6)  ;;  %v433_v30 = vld [vmem:[#allocation9 + $0x10] sm:$0xff] (!%p891_p6) }
  0xc0   : > { %v397_v8 = vsel %vm388_vm2, %v381_v2, -3.4028235e+38  ;;  %v400_v9 = vsel %vm388_vm2, %v381_v2, 0.0  ;;  %v1393_v31 = vmov (!%p891_p6), 0.0|0.0   ;;  %v1003_v32 = vpack.c.bf16 (!%p891_p6), %v432_v29, %v431_v28  ;;  %v434_v33 = vld [vmem:[#allocation9 + $0x18] sm:$0xff] (!%p891_p6)  ;;  %v427_v36 = vld [vmem:[#allocation7] sm:$0xff] (!%p891_p6) }
  0xc1   : > { %vm389_vm3 = vcmp.lt.s32.totalorder %v386_v6, 8  ;;  %vm390_vm4 = vcmp.lt.s32.totalorder %v387_v7, 8  ;;  %v405_v10 = vsel %vm404_vm1, %v397_v8, -inf  ;;  %v413_v11 = vsel %vm404_vm1, %v400_v9, 0.0  ;;  %1002 = vmatprep.subr.bf16.mxu0 (!%p891_p6), %v1393_v31  ;;  %1020 = vmatprep.subr.bf16.mxu1 (!%p891_p6), %v1393_v31  ;;  %v428_v37 = vld [vmem:[#allocation7 + $0x8] sm:$0xff] (!%p891_p6)  ;;  %v669_v38 = vld [vmem:[#allocation12] sm:$0xff] (!%p891_p6) }
  0xc2   : > { %v398_v12 = vsel %vm389_vm3, %v1668_v3, -3.4028235e+38  ;;  %v399_v13 = vsel %vm390_vm4, %v383_v5, -3.4028235e+38  ;;  %v401_v14 = vsel %vm389_vm3, %v1668_v3, 0.0  ;;  %v402_v15 = vsel %vm390_vm4, %v383_v5, 0.0  ;;  %1004 = vmatpush3.bf16.msra.mxu0 (!%p891_p6), %v1003_v32 }
  0xc3   : > { %v406_v16 = vsel %vm404_vm1, %v398_v12, -inf  ;;  %v407_v17 = vsel %vm404_vm1, %v399_v13, -inf  ;;  %v414_v18 = vsel %vm404_vm1, %v401_v14, 0.0  ;;  %v416_v19 = vsel %vm404_vm1, %v402_v15, 0.0  ;;  %1005 = vmatprep.subr.bf16.mxu0 (!%p891_p6), %v1393_v31  ;;  %v670_v39 = vld [vmem:[#allocation12 + $0x8] sm:$0xff] (!%p891_p6)  ;;  %v671_v40 = vld [vmem:[#allocation12 + $0x10] sm:$0xff] (!%p891_p6) }
  0xc4   : > { %v408_v20 = vmax.f32 %v405_v10, %v406_v16  ;;  %v415_v21 = vadd.f32 %v414_v18, %v413_v11  ;;  %423 = sbr.rel (%p891_p6) target bundleno = 659 (0x293), region = 76  ;;  %vm1394_vm5 = vmmov (!%p891_p6), 0   ;;  %v1395_v34 = vmov (!%p891_p6), 0.0   ;;  %v672_v41 = vld [vmem:[#allocation12 + $0x18] sm:$0xff] (!%p891_p6)  ;;  %v429_v45 = vld [vmem:[#allocation7 + $0x10] sm:$0xff] (!%p891_p6)  ;;  %v582_v49 = vld [vmem:[#allocation10] sm:$0xff] (!%p891_p6) }
  0xc5   : > { %942 = vmatprep.mubr.msk.f32.mxu0 (!%p891_p6), %vm1394_vm5, %v1395_v34  ;;  %999 = vmatprep.mubr.msk.f32.mxu1 (!%p891_p6), %vm1394_vm5, %v1395_v34  ;;  %v1006_v35 = vpack.c.bf16 (!%p891_p6), %v434_v33, %v433_v30  ;;  %v1021_v42 = vpack.c.bf16 (!%p891_p6), %v670_v39, %v669_v38  ;;  %vm435_vm6 = vcmask (!%p891_p6), 261120   ;;  %v1009_v44 = vpack.c.bf16 (!%p891_p6), %v428_v37, %v427_v36  ;;  %v430_v46 = vld [vmem:[#allocation7 + $0x18] sm:$0xff] (!%p891_p6)  ;;  %v583_v50 = vld [vmem:[#allocation10 + $0x8] sm:$0xff] (!%p891_p6)  ;;  %v584_v52 = vld [vmem:[#allocation10 + $0x10] sm:$0xff] (!%p891_p6)  ;;  %s1786_s23 = sld [smem:[#allocation21_spill]] (!%p891_p6) }
  0xc6   : > { %v409_v24 = vmax.f32 %v408_v20, %v407_v17  ;;  %v417_v25 = vadd.f32 %v416_v19, %v415_v21  ;;  %v1024_v47 = vpack.c.bf16 (!%p891_p6), %v672_v41, %v671_v40  ;;  %v1012_v48 = vpack.c.bf16 (!%p891_p6), %v430_v46, %v429_v45  ;;  %v585_v53 = vld [vmem:[#allocation10 + $0x18] sm:$0xff] (!%p891_p6)  ;;  %v673_v57 = vld [vmem:[#allocation12 + $0x20] sm:$0xff] (!%p891_p6)  ;;  %v674_v58 = vld [vmem:[#allocation12 + $0x28] sm:$0xff] (!%p891_p6) }
  0xc7   : > { %1007 = vmatpush3.bf16.msra.mxu0 (!%p891_p6), %v1006_v35  ;;  %1022 = vmatpush3.bf16.msra.mxu1 (!%p891_p6), %v1021_v42  ;;  %v1015_v51 = vpack.c.bf16 (!%p891_p6), %v583_v50, %v582_v49  ;;  %v1018_v54 = vpack.c.bf16 (!%p891_p6), %v585_v53, %v584_v52  ;;  %v1027_v59 = vpack.c.bf16 (!%p891_p6), %v674_v58, %v673_v57  ;;  %v675_v60 = vld [vmem:[#allocation12 + $0x30] sm:$0xff] (!%p891_p6)  ;;  %v676_v61 = vld [vmem:[#allocation12 + $0x38] sm:$0xff] (!%p891_p6)  ;;  %v677_v63 = vld [vmem:[#allocation12 + $0x40] sm:$0xff] (!%p891_p6) }
  0xc8   : > { %v410_v26 = vmax.f32 %v403_v22, %v409_v24  ;;  %v418_v27 = vadd.f32 %v417_v25, %v412_v23  ;;  %1008 = vmatprep.subr.bf16.mxu0 (!%p891_p6), %v1393_v31  ;;  %1023 = vmatprep.subr.bf16.mxu1 (!%p891_p6), %v1393_v31  ;;  %v1030_v62 = vpack.c.bf16 (!%p891_p6), %v676_v61, %v675_v60  ;;  %v678_v0 = vld [vmem:[#allocation12 + $0x48] sm:$0xff] (!%p891_p6)  ;;  %v679_v2 = vld [vmem:[#allocation12 + $0x50] sm:$0xff] (!%p891_p6)  ;;  %v681_v5 = vld [vmem:[#allocation12 + $0x60] sm:$0xff] (!%p891_p6) }
  0xc9   : > { %v1033_v1 = vpack.c.bf16 (!%p891_p6), %v678_v0, %v677_v63  ;;  %v682_v6 = vld [vmem:[#allocation12 + $0x68] sm:$0xff] (!%p891_p6)  ;;  %v683_v8 = vld [vmem:[#allocation12 + $0x70] sm:$0xff] (!%p891_p6)  ;;  %v684_v9 = vld [vmem:[#allocation12 + $0x78] sm:$0xff] (!%p891_p6) }
  0xca   : > { %411 = vst.msk [vmem:[#allocation2] sm:$0x3] %vm404_vm1, %v410_v26  ;;  %419 = vst.msk [vmem:[#allocation3] sm:$0x3] %vm404_vm1, %v418_v27  ;;  %v1039_v7 = vpack.c.bf16 (!%p891_p6), %v682_v6, %v681_v5  ;;  %v1042_v10 = vpack.c.bf16 (!%p891_p6), %v684_v9, %v683_v8  ;;  %v895_v17 = vld [vmem:[%s1759_s4] ss:$0 sm:$0xff] (!%p891_p6) }
  0xcb   : > { %1025 = vmatpush3.bf16.msra.mxu1 %v1024_v47  ;;  %v896_v22 = vld [vmem:[%s1786_s23] ss:$0 sm:$0xff] }
  0xcc   : > { %1026 = vmatprep.subr.bf16.mxu1 %v1393_v31 }
  0xcf   : > { %1028 = vmatpush3.bf16.msra.mxu1 %v1027_v59 }
  0xd0   : > { %1029 = vmatprep.subr.bf16.mxu1 %v1393_v31 }
  0xd1   : > { %v424_v43 = vld [vmem:[#allocation2] sm:$0x3]  ;;  %v425_v55 = vld [vmem:[#allocation3] sm:$0x3] }
  0xd2   : > { %943 = vmatmul.mubr.msk.f32.vlgmr.msra.gmra.mrb[0].mxu0 %vm435_vm6, %v424_v43  ;;  %v426_v56 = vmul.f32 0.125, %v425_v55 }
  0xd3   : > { %1010 = vmatpush3.bf16.msra.mxu0 %v1009_v44  ;;  %953 = vmatprep.mubr.msk.f32.mxu0 %vm1394_vm5, %v1395_v34 }
  0xd4   : > { %1011 = vmatprep.subr.bf16.mxu0 %v1393_v31  ;;  %1031 = vmatpush3.bf16.msra.mxu1 %v1030_v62 }
  0xd5   : > { %1032 = vmatprep.subr.bf16.mxu1 %v1393_v31 }
  0xd7   : > { %1013 = vmatpush3.bf16.msra.mxu0 %v1012_v48 }
  0xd8   : > { %1014 = vmatprep.subr.bf16.mxu0 %v1393_v31  ;;  %1034 = vmatpush3.bf16.msra.mxu1 %v1033_v1 }
  0xd9   : > { %1035 = vmatprep.subr.bf16.mxu1 %v1393_v31 }
  0xda   : > { %954 = vmatmul.mubr.msk.f32.vlgmr.msra.gmra.mrb[2].mxu0 %vm435_vm6, %v1668_v3  ;;  %v680_v3 = vld [vmem:[#allocation12 + $0x58] sm:$0xff] }
  0xdb   : > { %1016 = vmatpush3.bf16.msra.mxu0 %v1015_v51  ;;  %964 = vmatprep.mubr.msk.f32.mxu0 %vm1394_vm5, %v1395_v34  ;;  %v1036_v4 = vpack.c.bf16 %v680_v3, %v679_v2 }
  0xdc   : > { %1017 = vmatprep.subr.bf16.mxu0 %v1393_v31 }
  0xdd   : > { %1037 = vmatpush3.bf16.msra.mxu1 %v1036_v4 }
  0xde   : > { %1038 = vmatprep.subr.bf16.mxu1 %v1393_v31 }
  0xdf   : > { %1019 = vmatpush3.bf16.msra.mxu0 %v1018_v54 }
  0xe1   : > { %1040 = vmatpush3.bf16.msra.mxu1 %v1039_v7 }
  0xe2   : > { %965 = vmatmul.mubr.msk.f32.vlgmr.msra.gmra.mrb[4].mxu0 %vm435_vm6, %v426_v56  ;;  %1041 = vmatprep.subr.bf16.mxu1 %v1393_v31 }
  0xe5   : > { %1043 = vmatpush3.bf16.msra.mxu1 %v1042_v10 }
 0x1a5   : > { %v505_v11 = vpop.f32.mrb[0].mxu0 }
 0x1a6   : > { %v944_v12 = vpop.f32.mrb[1].mxu0 }
 0x1ad   : > { %v578_v13 = vpop.f32.mrb[2].mxu0 }
 0x1ae   : > { %v579_v14 = vadd.f32 %v578_v13, %v505_v11  ;;  %v955_v15 = vpop.f32.mrb[3].mxu0 }
 0x1b5   : > { %v655_v16 = vpop.f32.mrb[4].mxu0 }
 0x1b6   : > { %v659_v18 = vadd.f32 %v655_v16, %v579_v14  ;;  %v966_v19 = vpop.f32.mrb[5].mxu0 }
 0x1b8   : > { %v667_v20 = vadd.f32 %v895_v17, %v659_v18 }
 0x1ba   : > { %v668_v21 = vmax.f32 %v667_v20, 0.0 }
 0x1bc   : > { %1000 = vmatmul.mubr.f32.vlgmr.msra.gmra.mrb[0].mxu1 %v668_v21 }
 0x28f   : > { %v758_v23 = vpop.f32.mrb[0].mxu1 }
 0x290   : > { %v759_v24 = vadd.f32 %v896_v22, %v758_v23  ;;  %v1001_v25 = vpop.f32.mrb[1].mxu1 }
 0x292   : > { %762 = vst [vmem:[#allocation13] sm:$0x3] %v759_v24 }
 0x293 PF: > { %s1787_s24 = sadd.s32 4294967295, %s1380_s29   ;;  %s1396_s7 = smov [#allocation13]  }
 0x294   : > { %p1711_p7 = scmp.eq.s32.totalorder %s1787_s24, 2  ;;  %s772_s14 = sshll.u32 %s1396_s7, 4  ;;  %s773_s14 = int_to_ptr.vmem [resolvable:$true] %s772_s14 }
 0x295   : > { %s1292_s20 = scalar_lea.vmem %s773_s14, 32  ;;  %p1299_p0 = scmp.lt.s32.totalorder %s773_s14, %s773_s14 }
 0x296   : > { %p1293_p9 = scmp.ne.s32.totalorder %s773_s14, %s1292_s20  ;;  %p1300_p5 = scmp.lt.s32.totalorder %s1292_s20, %s1292_s20 }
 0x298   : > { %p1294_p11 = pnand %p1293_p9, %p1711_p7  ;;  %p1301_p8 = por %p1300_p5, %p1299_p0 }
 0x29a   : > { %p1295_p3 = pneg %p1294_p11 }
 0x29c   : > { %p1302_p10 = pnand %p1301_p8, %p1295_p3 }
 0x29e   : > { %1305 = shalt.err (!%p1302_p10)
}
 0x29f   : > { %s1789_s6 = sld [smem:[#allocation22_spill]] }
 0x2a5   : > { %s1306_s30 = scalar_lea.hbm %s1789_s6, 32 }
 0x2a6   : > { %p1307_p1 = scmp.ne.s32.totalorder %s1789_s6, %s1306_s30  ;;  %p1312_p4 = scmp.lt.u32.totalorder %s1306_s30, %s1789_s6 }
 0x2a8   : > { %p1308_p13 = pnand %p1307_p1, %p1711_p7 }
 0x2aa   : > { %p1309_p2 = pneg %p1308_p13 }
 0x2ac   : > { %p1314_p12 = pnand %p1312_p4, %p1309_p2 }
 0x2ae   : > { %1317 = shalt.err (!%p1314_p12)
}
 0x2af   : > { %1064 = dma.vmem_to_hbm [thread:$0]  (%p1711_p7), %s773_s14, 32, %s1789_s6, [#allocation6]  }
 0x2b0   : > { %1355 = dma.done.wait (%p1711_p7), [#allocation6], 32  }
 0x2b1   : > { %1357 = vsyncadd (%p1711_p7), [#allocation6], 4294967264 }
 0x2b2 PF: > { %s23_s29 = sadd.s32 1, %s1380_s29   ;;  %s1790_s17 = sld [smem:[#allocation19_spill]] }
 0x2b3   : > { %p20_p6 = scmp.ge.s32.totalorder %s23_s29, 5   ;;  %s1791_s13 = sld [smem:[#allocation18_spill]] }
 0x2b4   : > { %s1792_s24 = smov %s1364_s25  ;;  %s1793_s25 = smov %s1368_s26 }
 0x2b5   : > { %s1795_s27 = smov %s1376_s28  ;;  %22 = sbr.rel (!%p20_p6) target bundleno = 11 (0xb), region = 110 }
 0x2b8   : > { %s1794_s26 = smov %s1790_s17 }
 0x2b9   : > { %s1796_s28 = smov %s1791_s13 }
 0x2bc   :  { %785 = vsyncpa [#allocation5], 1 }
 0x2bd   :  { %787 = vsyncpa [#allocation5 + $0x1], 1 }
 0x2be   :  { %788 = vsyncpa [#allocation8], 1 }
 0x2bf   :  { %789 = vsyncpa [#allocation11], 1 }
 0x2c0   :  { %790 = vsyncpa [#allocation6], 1 }
 0x2c1   :  { %792 = vsyncpa [#allocation6 + $0x1], 1 }

</bundles_post_ra>
